<compile_context>
chip_gen: v6e
topology: v6e:2x2x1
jax: 0.10.0
libtpu: 0.0.40
codegen_flags: <defaults>
</compile_context>

<pallas_src>
import jax
import jax.numpy as jnp
from jax.experimental import pallas as pl
from jax.experimental.pallas import tpu as pltpu


def encoder_decoder_kernel(
    xT_ref,                       # [X_dim, TB]   input tile, feature-major
    we1_ref, be1_ref,             # encoder Linear(X_dim -> map_dim)
    we2_ref, be2_ref,             # encoder Linear(map_dim -> enc_dim)
    wcl_ref, bcl_ref,             # cl1: enc_dim independent Linear(1 -> 1)
    wd1_ref, bd1_ref,             # decoder Linear(enc_dim -> map_dim)
    wd2_ref, bd2_ref,             # decoder Linear(map_dim -> X_dim)
    yhatT_ref, xhatT_ref, HT_ref, ench1T_ref, dech1T_ref,
):
    xT = xT_ref[...]                                            # [X_dim, TB]

    # ---------------- encoder ----------------
    h1e = jnp.tanh(
        jnp.dot(we1_ref[...], xT, preferred_element_type=jnp.float32)
        + be1_ref[...]
    )                                                           # [map_dim, TB]
    # TODO(synk): eval-mode dropout == identity.
    ench1T_ref[...] = h1e.astype(ench1T_ref.dtype)

    H = jnp.tanh(
        jnp.dot(we2_ref[...], h1e, preferred_element_type=jnp.float32)
        + be2_ref[...]
    )                                                           # [enc_dim, TB]
    HT_ref[...] = H.astype(HT_ref.dtype)

    # cl1: per-feature scale + bias (enc_dim independent Linear(1->1)), then Tanh.
    yhatT_ref[...] = jnp.tanh(wcl_ref[...] * H + bcl_ref[...]).astype(yhatT_ref.dtype)

    # ---------------- decoder ----------------
    h1d = jnp.tanh(
        jnp.dot(wd1_ref[...], H, preferred_element_type=jnp.float32)
        + bd1_ref[...]
    )                                                           # [map_dim, TB]
    dech1T_ref[...] = h1d.astype(dech1T_ref.dtype)

    xhatT_ref[...] = (
        jnp.dot(wd2_ref[...], h1d, preferred_element_type=jnp.float32)
        + bd2_ref[...]
    ).astype(xhatT_ref.dtype)                                   # [X_dim, TB]


def encoder_decoder_forward(x, params, *, tb=2048):
    """x: [B, X_dim_in] (batch-major, f32).
    params: PyTorch-layout weights W: [out, in] and biases b: [out, 1]."""
    we1, be1 = params["enc_w1"], params["enc_b1"]
    we2, be2 = params["enc_w2"], params["enc_b2"]
    wcl, bcl = params["cl_w"], params["cl_b"]
    wd1, bd1 = params["dec_w1"], params["dec_b1"]
    wd2, bd2 = params["dec_w2"], params["dec_b2"]

    B, x_dim = x.shape
    map_dim = we1.shape[0]
    enc_dim = we2.shape[0]

    # Lane-dense, feature-major layout: batch maps onto the 128-lane axis.
    tb = max(128, (tb // 128) * 128)
    b_pad = pl.cdiv(B, 128) * 128
    if b_pad <= tb:
        tb = b_pad
    else:
        b_pad = pl.cdiv(b_pad, tb) * tb
    grid_n = b_pad // tb

    xT = x.T                                                    # [X_dim, B]
    if b_pad != B:
        xT = jnp.pad(xT, ((0, 0), (0, b_pad - B)))

    batch_spec = lambda feat: pl.BlockSpec((feat, tb), lambda i: (0, i))
    resident = lambda shape: pl.BlockSpec(shape, lambda i: (0, 0))

    flops = 2 * b_pad * (map_dim * x_dim + enc_dim * map_dim
                         + map_dim * enc_dim + x_dim * map_dim)
    transcendentals = b_pad * (2 * map_dim + 2 * enc_dim)
    bytes_accessed = 4 * b_pad * (2 * x_dim + 2 * enc_dim + 2 * map_dim + enc_dim)

    outs = pl.pallas_call(
        encoder_decoder_kernel,
        grid=(grid_n,),
        in_specs=[
            batch_spec(x_dim),
            resident(we1.shape), resident(be1.shape),
            resident(we2.shape), resident(be2.shape),
            resident(wcl.shape), resident(bcl.shape),
            resident(wd1.shape), resident(bd1.shape),
            resident(wd2.shape), resident(bd2.shape),
        ],
        out_specs=[
            batch_spec(enc_dim),   # y_hat^T
            batch_spec(x_dim),     # x_hat^T
            batch_spec(enc_dim),   # H^T
            batch_spec(map_dim),   # encoder hidden^T
            batch_spec(map_dim),   # decoder hidden^T
        ],
        out_shape=[
            jax.ShapeDtypeStruct((enc_dim, b_pad), jnp.float32),
            jax.ShapeDtypeStruct((x_dim, b_pad), jnp.float32),
            jax.ShapeDtypeStruct((enc_dim, b_pad), jnp.float32),
            jax.ShapeDtypeStruct((map_dim, b_pad), jnp.float32),
            jax.ShapeDtypeStruct((map_dim, b_pad), jnp.float32),
        ],
        compiler_params=pltpu.CompilerParams(
            dimension_semantics=("parallel",),
        ),
        cost_estimate=pl.CostEstimate(
            flops=flops,
            transcendentals=transcendentals,
            bytes_accessed=bytes_accessed,
        ),
    )(xT, we1, be1, we2, be2, wcl, bcl, wd1, bd1, wd2, bd2)

    yhatT, xhatT, HT, ench1T, dech1T = outs
    unT = lambda a: a[:, :B].T                                  # strip pad, back to [B, feat]
    y_hat, x_hat, H = unT(yhatT), unT(xhatT), unT(HT)
    activations = [unT(ench1T), H, unT(dech1T)]
    return y_hat, x_hat, H, activations


def init_linear(key, in_features, out_features):
    """PyTorch-style Linear init U(-1/sqrt(fan_in), 1/sqrt(fan_in)).
    Returns W: [out, in] (native PyTorch layout) and b: [out, 1]."""
    kw, kb = jax.random.split(key)
    bound = float(in_features) ** -0.5
    w = jax.random.uniform(kw, (out_features, in_features), jnp.float32,
                           minval=-bound, maxval=bound)
    b = jax.random.uniform(kb, (out_features, 1), jnp.float32,
                           minval=-bound, maxval=bound)
    return w, b


if __name__ == "__main__":
    # Small shapes consistent with module defaults.
    B = 256
    X_dim_in = 32
    map_dim = 20
    enc_dim = 10

    key = jax.random.PRNGKey(0)
    kx, k1, k2, k3, k4, k5 = jax.random.split(key, 6)

    x = jax.random.normal(kx, (B, X_dim_in), jnp.float32)

    enc_w1, enc_b1 = init_linear(k1, X_dim_in, map_dim)   # Linear(32 -> 20)
    enc_w2, enc_b2 = init_linear(k2, map_dim, enc_dim)    # Linear(20 -> 10)
    cl_w, cl_b = init_linear(k3, 1, enc_dim)              # 10 x Linear(1 -> 1)
    dec_w1, dec_b1 = init_linear(k4, enc_dim, map_dim)    # Linear(10 -> 20)
    dec_w2, dec_b2 = init_linear(k5, map_dim, X_dim_in)   # Linear(20 -> 32)

    params = dict(enc_w1=enc_w1, enc_b1=enc_b1, enc_w2=enc_w2, enc_b2=enc_b2,
                  cl_w=cl_w, cl_b=cl_b, dec_w1=dec_w1, dec_b1=dec_b1,
                  dec_w2=dec_w2, dec_b2=dec_b2)

    # TB=128 at this small B -> grid=(2,), exercises the batch tiling path.
    y_hat, x_hat, H, acts = encoder_decoder_forward(x, params, tb=128)
    (y_hat, x_hat, H, acts) = jax.block_until_ready((y_hat, x_hat, H, acts))

    # Also exercise the default (single-tile) path once.
    _ = jax.block_until_ready(encoder_decoder_forward(x, params))

    # Pure-JAX reference (eval-mode dropout == identity).
    enc_h1_ref = jnp.tanh(x @ enc_w1.T + enc_b1[:, 0])
    H_ref = jnp.tanh(enc_h1_ref @ enc_w2.T + enc_b2[:, 0])
    y_hat_ref = jnp.tanh(H_ref * cl_w[:, 0] + cl_b[:, 0])
    dec_h1_ref = jnp.tanh(H_ref @ dec_w1.T + dec_b1[:, 0])
    x_hat_ref = dec_h1_ref @ dec_w2.T + dec_b2[:, 0]

    tol = dict(atol=2e-5, rtol=2e-5)
    assert jnp.allclose(y_hat, y_hat_ref, **tol), "y_hat mismatch"
    assert jnp.allclose(x_hat, x_hat_ref, **tol), "x_hat mismatch"
    assert jnp.allclose(H, H_ref, **tol), "H mismatch"
    assert jnp.allclose(acts[0], enc_h1_ref, **tol), "encoder hidden mismatch"
    assert jnp.allclose(acts[1], H_ref, **tol), "H activation mismatch"
    assert jnp.allclose(acts[2], dec_h1_ref, **tol), "decoder hidden mismatch"

    print("KERNEL_OK")
</pallas_src>

<mosaic_0001>
module attributes {stable_mosaic.version = 11 : i64} {
  func.func @encoder_decoder_kernel(%arg0: i32, %arg1: memref<32x128xf32, #tpu.memory_space<vmem>>, %arg2: memref<20x32xf32, #tpu.memory_space<vmem>>, %arg3: memref<20x1xf32, #tpu.memory_space<vmem>>, %arg4: memref<10x20xf32, #tpu.memory_space<vmem>>, %arg5: memref<10x1xf32, #tpu.memory_space<vmem>>, %arg6: memref<10x1xf32, #tpu.memory_space<vmem>>, %arg7: memref<10x1xf32, #tpu.memory_space<vmem>>, %arg8: memref<20x10xf32, #tpu.memory_space<vmem>>, %arg9: memref<20x1xf32, #tpu.memory_space<vmem>>, %arg10: memref<32x20xf32, #tpu.memory_space<vmem>>, %arg11: memref<32x1xf32, #tpu.memory_space<vmem>>, %arg12: memref<10x128xf32, #tpu.memory_space<vmem>>, %arg13: memref<32x128xf32, #tpu.memory_space<vmem>>, %arg14: memref<10x128xf32, #tpu.memory_space<vmem>>, %arg15: memref<20x128xf32, #tpu.memory_space<vmem>>, %arg16: memref<20x128xf32, #tpu.memory_space<vmem>>) attributes {dimension_semantics = [#tpu.dimension_semantics<parallel>], iteration_bounds = array<i64: 2>, scalar_prefetch = 0 : i64, scratch_operands = 0 : i64, tpu.core_type = #tpu.core_type<tc>, window_params = [{transform_indices = @transform_0, window_bounds = array<i64: 32, 128>}, {pipeline_mode = #tpu.pipeline_mode<synchronous>, transform_indices = @transform_1, window_bounds = array<i64: 20, 32>}, {pipeline_mode = #tpu.pipeline_mode<synchronous>, transform_indices = @transform_2, window_bounds = array<i64: 20, 1>}, {pipeline_mode = #tpu.pipeline_mode<synchronous>, transform_indices = @transform_3, window_bounds = array<i64: 10, 20>}, {pipeline_mode = #tpu.pipeline_mode<synchronous>, transform_indices = @transform_4, window_bounds = array<i64: 10, 1>}, {pipeline_mode = #tpu.pipeline_mode<synchronous>, transform_indices = @transform_5, window_bounds = array<i64: 10, 1>}, {pipeline_mode = #tpu.pipeline_mode<synchronous>, transform_indices = @transform_6, window_bounds = array<i64: 10, 1>}, {pipeline_mode = #tpu.pipeline_mode<synchronous>, transform_indices = @transform_7, window_bounds = array<i64: 20, 10>}, {pipeline_mode = #tpu.pipeline_mode<synchronous>, transform_indices = @transform_8, window_bounds = array<i64: 20, 1>}, {pipeline_mode = #tpu.pipeline_mode<synchronous>, transform_indices = @transform_9, window_bounds = array<i64: 32, 20>}, {pipeline_mode = #tpu.pipeline_mode<synchronous>, transform_indices = @transform_10, window_bounds = array<i64: 32, 1>}, {transform_indices = @transform_11, window_bounds = array<i64: 10, 128>}, {transform_indices = @transform_12, window_bounds = array<i64: 32, 128>}, {transform_indices = @transform_13, window_bounds = array<i64: 10, 128>}, {transform_indices = @transform_14, window_bounds = array<i64: 20, 128>}, {transform_indices = @transform_15, window_bounds = array<i64: 20, 128>}]} {
    %c0 = arith.constant 0 : index
    %c0_0 = arith.constant 0 : index
    %0 = vector.load %arg1[%c0, %c0_0] : memref<32x128xf32, #tpu.memory_space<vmem>>, vector<32x128xf32>
    %c0_1 = arith.constant 0 : index
    %c0_2 = arith.constant 0 : index
    %1 = vector.load %arg2[%c0_1, %c0_2] : memref<20x32xf32, #tpu.memory_space<vmem>>, vector<20x32xf32>
    %cst = arith.constant dense<0.000000e+00> : vector<20x128xf32>
    %2 = tpu.matmul %1, %0, %cst {dimension_numbers = #tpu.dot_dimension_numbers<[1], [0], [0], [1], [0, 0, 1, 1], [], []>} : vector<20x32xf32>, vector<32x128xf32>, vector<20x128xf32> -> vector<20x128xf32>
    %c0_3 = arith.constant 0 : index
    %c0_4 = arith.constant 0 : index
    %3 = vector.load %arg3[%c0_3, %c0_4] : memref<20x1xf32, #tpu.memory_space<vmem>>, vector<20x1xf32>
    %4 = vector.broadcast %3 : vector<20x1xf32> to vector<20x128xf32>
    %5 = arith.addf %2, %4 : vector<20x128xf32>
    %6 = math.tanh %5 : vector<20x128xf32>
    %c0_5 = arith.constant 0 : index
    %c0_6 = arith.constant 0 : index
    %7 = vector.load %arg15[%c0_5, %c0_6] : memref<20x128xf32, #tpu.memory_space<vmem>>, vector<20x128xf32>
    tpu.vector_store %arg15[%c0_5, %c0_6], %6 {strides = array<i32>} : memref<20x128xf32, #tpu.memory_space<vmem>>, vector<20x128xf32>,
    %c0_7 = arith.constant 0 : index
    %c0_8 = arith.constant 0 : index
    %8 = vector.load %arg4[%c0_7, %c0_8] : memref<10x20xf32, #tpu.memory_space<vmem>>, vector<10x20xf32>
    %cst_9 = arith.constant dense<0.000000e+00> : vector<10x128xf32>
    %9 = tpu.matmul %8, %6, %cst_9 {dimension_numbers = #tpu.dot_dimension_numbers<[1], [0], [0], [1], [0, 0, 1, 1], [], []>} : vector<10x20xf32>, vector<20x128xf32>, vector<10x128xf32> -> vector<10x128xf32>
    %c0_10 = arith.constant 0 : index
    %c0_11 = arith.constant 0 : index
    %10 = vector.load %arg5[%c0_10, %c0_11] : memref<10x1xf32, #tpu.memory_space<vmem>>, vector<10x1xf32>
    %11 = vector.broadcast %10 : vector<10x1xf32> to vector<10x128xf32>
    %12 = arith.addf %9, %11 : vector<10x128xf32>
    %13 = math.tanh %12 : vector<10x128xf32>
    %c0_12 = arith.constant 0 : index
    %c0_13 = arith.constant 0 : index
    %14 = vector.load %arg14[%c0_12, %c0_13] : memref<10x128xf32, #tpu.memory_space<vmem>>, vector<10x128xf32>
    tpu.vector_store %arg14[%c0_12, %c0_13], %13 {strides = array<i32>} : memref<10x128xf32, #tpu.memory_space<vmem>>, vector<10x128xf32>,
    %c0_14 = arith.constant 0 : index
    %c0_15 = arith.constant 0 : index
    %15 = vector.load %arg6[%c0_14, %c0_15] : memref<10x1xf32, #tpu.memory_space<vmem>>, vector<10x1xf32>
    %16 = vector.broadcast %15 : vector<10x1xf32> to vector<10x128xf32>
    %17 = arith.mulf %16, %13 : vector<10x128xf32>
    %c0_16 = arith.constant 0 : index
    %c0_17 = arith.constant 0 : index
    %18 = vector.load %arg7[%c0_16, %c0_17] : memref<10x1xf32, #tpu.memory_space<vmem>>, vector<10x1xf32>
    %19 = vector.broadcast %18 : vector<10x1xf32> to vector<10x128xf32>
    %20 = arith.addf %17, %19 : vector<10x128xf32>
    %21 = math.tanh %20 : vector<10x128xf32>
    %c0_18 = arith.constant 0 : index
    %c0_19 = arith.constant 0 : index
    %22 = vector.load %arg12[%c0_18, %c0_19] : memref<10x128xf32, #tpu.memory_space<vmem>>, vector<10x128xf32>
    tpu.vector_store %arg12[%c0_18, %c0_19], %21 {strides = array<i32>} : memref<10x128xf32, #tpu.memory_space<vmem>>, vector<10x128xf32>,
    %c0_20 = arith.constant 0 : index
    %c0_21 = arith.constant 0 : index
    %23 = vector.load %arg8[%c0_20, %c0_21] : memref<20x10xf32, #tpu.memory_space<vmem>>, vector<20x10xf32>
    %cst_22 = arith.constant dense<0.000000e+00> : vector<20x128xf32>
    %24 = tpu.matmul %23, %13, %cst_22 {dimension_numbers = #tpu.dot_dimension_numbers<[1], [0], [0], [1], [0, 0, 1, 1], [], []>} : vector<20x10xf32>, vector<10x128xf32>, vector<20x128xf32> -> vector<20x128xf32>
    %c0_23 = arith.constant 0 : index
    %c0_24 = arith.constant 0 : index
    %25 = vector.load %arg9[%c0_23, %c0_24] : memref<20x1xf32, #tpu.memory_space<vmem>>, vector<20x1xf32>
    %26 = vector.broadcast %25 : vector<20x1xf32> to vector<20x128xf32>
    %27 = arith.addf %24, %26 : vector<20x128xf32>
    %28 = math.tanh %27 : vector<20x128xf32>
    %c0_25 = arith.constant 0 : index
    %c0_26 = arith.constant 0 : index
    %29 = vector.load %arg16[%c0_25, %c0_26] : memref<20x128xf32, #tpu.memory_space<vmem>>, vector<20x128xf32>
    tpu.vector_store %arg16[%c0_25, %c0_26], %28 {strides = array<i32>} : memref<20x128xf32, #tpu.memory_space<vmem>>, vector<20x128xf32>,
    %c0_27 = arith.constant 0 : index
    %c0_28 = arith.constant 0 : index
    %30 = vector.load %arg10[%c0_27, %c0_28] : memref<32x20xf32, #tpu.memory_space<vmem>>, vector<32x20xf32>
    %cst_29 = arith.constant dense<0.000000e+00> : vector<32x128xf32>
    %31 = tpu.matmul %30, %28, %cst_29 {dimension_numbers = #tpu.dot_dimension_numbers<[1], [0], [0], [1], [0, 0, 1, 1], [], []>} : vector<32x20xf32>, vector<20x128xf32>, vector<32x128xf32> -> vector<32x128xf32>
    %c0_30 = arith.constant 0 : index
    %c0_31 = arith.constant 0 : index
    %32 = vector.load %arg11[%c0_30, %c0_31] : memref<32x1xf32, #tpu.memory_space<vmem>>, vector<32x1xf32>
    %33 = vector.broadcast %32 : vector<32x1xf32> to vector<32x128xf32>
    %34 = arith.addf %31, %33 : vector<32x128xf32>
    %c0_32 = arith.constant 0 : index
    %c0_33 = arith.constant 0 : index
    %35 = vector.load %arg13[%c0_32, %c0_33] : memref<32x128xf32, #tpu.memory_space<vmem>>, vector<32x128xf32>
    tpu.vector_store %arg13[%c0_32, %c0_33], %34 {strides = array<i32>} : memref<32x128xf32, #tpu.memory_space<vmem>>, vector<32x128xf32>,
    return
  }
  func.func @transform_0(%arg0: i32) -> (i32, i32) {
    %c0_i32 = arith.constant 0 : i32
    %c0_i32_0 = arith.constant 0 : i32
    return %c0_i32, %arg0 : i32, i32
  }
  func.func @transform_1(%arg0: i32) -> (i32, i32) {
    %c0_i32 = arith.constant 0 : i32
    %c0_i32_0 = arith.constant 0 : i32
    %c0_i32_1 = arith.constant 0 : i32
    return %c0_i32, %c0_i32_0 : i32, i32
  }
  func.func @transform_2(%arg0: i32) -> (i32, i32) {
    %c0_i32 = arith.constant 0 : i32
    %c0_i32_0 = arith.constant 0 : i32
    %c0_i32_1 = arith.constant 0 : i32
    return %c0_i32, %c0_i32_0 : i32, i32
  }
  func.func @transform_3(%arg0: i32) -> (i32, i32) {
    %c0_i32 = arith.constant 0 : i32
    %c0_i32_0 = arith.constant 0 : i32
    %c0_i32_1 = arith.constant 0 : i32
    return %c0_i32, %c0_i32_0 : i32, i32
  }
  func.func @transform_4(%arg0: i32) -> (i32, i32) {
    %c0_i32 = arith.constant 0 : i32
    %c0_i32_0 = arith.constant 0 : i32
    %c0_i32_1 = arith.constant 0 : i32
    return %c0_i32, %c0_i32_0 : i32, i32
  }
  func.func @transform_5(%arg0: i32) -> (i32, i32) {
    %c0_i32 = arith.constant 0 : i32
    %c0_i32_0 = arith.constant 0 : i32
    %c0_i32_1 = arith.constant 0 : i32
    return %c0_i32, %c0_i32_0 : i32, i32
  }
  func.func @transform_6(%arg0: i32) -> (i32, i32) {
    %c0_i32 = arith.constant 0 : i32
    %c0_i32_0 = arith.constant 0 : i32
    %c0_i32_1 = arith.constant 0 : i32
    return %c0_i32, %c0_i32_0 : i32, i32
  }
  func.func @transform_7(%arg0: i32) -> (i32, i32) {
    %c0_i32 = arith.constant 0 : i32
    %c0_i32_0 = arith.constant 0 : i32
    %c0_i32_1 = arith.constant 0 : i32
    return %c0_i32, %c0_i32_0 : i32, i32
  }
  func.func @transform_8(%arg0: i32) -> (i32, i32) {
    %c0_i32 = arith.constant 0 : i32
    %c0_i32_0 = arith.constant 0 : i32
    %c0_i32_1 = arith.constant 0 : i32
    return %c0_i32, %c0_i32_0 : i32, i32
  }
  func.func @transform_9(%arg0: i32) -> (i32, i32) {
    %c0_i32 = arith.constant 0 : i32
    %c0_i32_0 = arith.constant 0 : i32
    %c0_i32_1 = arith.constant 0 : i32
    return %c0_i32, %c0_i32_0 : i32, i32
  }
  func.func @transform_10(%arg0: i32) -> (i32, i32) {
    %c0_i32 = arith.constant 0 : i32
    %c0_i32_0 = arith.constant 0 : i32
    %c0_i32_1 = arith.constant 0 : i32
    return %c0_i32, %c0_i32_0 : i32, i32
  }
  func.func @transform_11(%arg0: i32) -> (i32, i32) {
    %c0_i32 = arith.constant 0 : i32
    %c0_i32_0 = arith.constant 0 : i32
    return %c0_i32, %arg0 : i32, i32
  }
  func.func @transform_12(%arg0: i32) -> (i32, i32) {
    %c0_i32 = arith.constant 0 : i32
    %c0_i32_0 = arith.constant 0 : i32
    return %c0_i32, %arg0 : i32, i32
  }
  func.func @transform_13(%arg0: i32) -> (i32, i32) {
    %c0_i32 = arith.constant 0 : i32
    %c0_i32_0 = arith.constant 0 : i32
    return %c0_i32, %arg0 : i32, i32
  }
  func.func @transform_14(%arg0: i32) -> (i32, i32) {
    %c0_i32 = arith.constant 0 : i32
    %c0_i32_0 = arith.constant 0 : i32
    return %c0_i32, %arg0 : i32, i32
  }
  func.func @transform_15(%arg0: i32) -> (i32, i32) {
    %c0_i32 = arith.constant 0 : i32
    %c0_i32_0 = arith.constant 0 : i32
    return %c0_i32, %arg0 : i32, i32
  }
}

</mosaic_0001>

<bundles_post_ra>
// kernel: tpu_custom_call.1
= control target key start
LH: loop header
LB: loop body
LE: loop exit
PB: predicated region body
PF: predicated region fallthrough
CT: control target
= control target key end

     0   :  { %s2240_s0 = inlined_call_operand.vmem [shape: f32[32,256], index: 0, kind: input, shape index: {}]   ;;  %s2241_s1 = inlined_call_operand.vmem [shape: f32[20,32], index: 1, kind: input, shape index: {}]   ;;  %s2242_s2 = inlined_call_operand.vmem [shape: f32[20,1], index: 2, kind: input, shape index: {}]   ;;  %s2243_s3 = inlined_call_operand.vmem [shape: f32[10,20], index: 3, kind: input, shape index: {}]   ;;  %s2244_s4 = inlined_call_operand.vmem [shape: f32[10,1], index: 4, kind: input, shape index: {}]   ;;  %s2245_s5 = inlined_call_operand.vmem [shape: f32[10,1], index: 5, kind: input, shape index: {}]   ;;  %s2246_s6 = inlined_call_operand.vmem [shape: f32[10,1], index: 6, kind: input, shape index: {}]   ;;  %s2247_s7 = inlined_call_operand.vmem [shape: f32[20,10], index: 7, kind: input, shape index: {}]   ;;  %s2248_s8 = inlined_call_operand.vmem [shape: f32[20,1], index: 8, kind: input, shape index: {}]   ;;  %s2249_s9 = inlined_call_operand.vmem [shape: f32[32,20], index: 9, kind: input, shape index: {}]   ;;  %s2250_s10 = inlined_call_operand.vmem [shape: f32[32,1], index: 10, kind: input, shape index: {}]   ;;  %s2251_s11 = inlined_call_operand.hbm [shape: f32[10,256], index: 11, kind: output, shape index: {0}]   ;;  %s2252_s12 = inlined_call_operand.hbm [shape: f32[32,256], index: 12, kind: output, shape index: {1}]   ;;  %s2253_s13 = inlined_call_operand.hbm [shape: f32[10,256], index: 13, kind: output, shape index: {2}]   ;;  %s2254_s14 = inlined_call_operand.hbm [shape: f32[20,256], index: 14, kind: output, shape index: {3}]   ;;  %s2255_s15 = inlined_call_operand.hbm [shape: f32[20,256], index: 15, kind: output, shape index: {4}]  }
   0x1   :  { %2266 = sst [smem:[#allocation16_spill]] %s2240_s0 }
   0x2   :  { %2267 = sst [smem:[#allocation17_spill]] %s2241_s1 }
   0x3   :  { %2268 = sst [smem:[#allocation18_spill]] %s2242_s2 }
   0x4   :  { %2269 = sst [smem:[#allocation19_spill]] %s2243_s3 }
   0x5   :  { %2270 = sst [smem:[#allocation20_spill]] %s2244_s4 }
   0x6   :  { %2271 = sst [smem:[#allocation21_spill]] %s2245_s5 }
   0x7   :  { %2272 = sst [smem:[#allocation22_spill]] %s2246_s6 }
   0x8   :  { %2273 = sst [smem:[#allocation23_spill]] %s2247_s7 }
   0x9   :  { %2274 = sst [smem:[#allocation24_spill]] %s2248_s8 }
   0xa   :  { %2275 = sst [smem:[#allocation25_spill]] %s2249_s9 }
   0xb   :  { %2276 = sst [smem:[#allocation26_spill]] %s2250_s10 }
   0xc   :  { %21 = vsyncpa [#allocation4], 0 }
   0xd   :  { %23 = vsyncpa [#allocation4 + $0x1], 0 }
   0xe   :  { %24 = vsyncpa [#allocation6], 0 }
   0xf   :  { %26 = vsyncpa [#allocation6 + $0x1], 0 }
  0x10   :  { %27 = vsyncpa [#allocation9], 0 }
  0x11   :  { %29 = vsyncpa [#allocation9 + $0x1], 0  ;;  %s1837_s18 = smov 0   ;;  %s1839_s19 = smov 0  }
  0x12   :  { %s1841_s20 = smov 0   ;;  %s1843_s21 = smov 0  }
  0x13 LB: > { %2277 = sst [smem:[#allocation14_spill]] %s1740_s20  ;;  %s1858_s22 = sadd.s32 4294967295, %s1744_s21   ;;  %s1744_s21 = sphi %s1843_s21, %s2304_s21   ;;  %s1740_s20 = sphi %s1841_s20, %s2301_s20   ;;  %s1736_s19 = sphi %s1839_s19, %s2303_s19   ;;  %s1732_s18 = sphi %s1837_s18, %s2302_s18  }
  0x14   : > { %s2256_s23 = sadd.s32 4294967294, %s1744_s21   ;;  %s1862_s24 = sadd.s32 1, %s1744_s21  }
  0x15   : > { %s42_s25 = sadd.s32 1, %s1740_s20  ;;  %s39_s26 = ssub.s32 %s1744_s21, %s1862_s24 }
  0x16   : > { %p49_p0 = scmp.ne.s32.totalorder %s1740_s20, %s1736_s19  ;;  %p40_p1 = scmp.eq.s32.totalorder %s39_s26, 0 }
  0x17   : > { %p50_p2 = scmp.eq.s32.totalorder %s1744_s21, 0  ;;  %p289_p3 = scmp.eq.s32.totalorder %s1858_s22, 1 }
  0x18   : > { %p294_p4 = scmp.ne.s32.totalorder %s1736_s19, %s1732_s18  ;;  %p295_p7 = scmp.eq.s32.totalorder %s2256_s23, 1 }
  0x19   : > { %s1874_s27 = scalar_select %p40_p1, %s1740_s20, %s42_s25  }
  0x1a   : > { %p51_p5 = por %p50_p2, %p49_p0  ;;  %p1876_p6 = por %p289_p3, %p49_p0 }
  0x1b   : > { %2278 = sst [smem:[#allocation15_spill]] %s1874_s27  ;;  %p1882_p8 = por %p295_p7, %p294_p4 }
  0x1c   : > { %p2265_p9 = scmp.ge.s32.totalorder %s1744_s21, 2 }
  0x1e   : > { %445 = sbr.rel (%p2265_p9) target bundleno = 47 (0x2f), region = 56 }
  0x23   : > { %448 = sbr.rel (!%p51_p5) target bundleno = 47 (0x2f), region = 60  ;;  %s450_s30 = sand.u32 (%p51_p5), 1, %s1740_s20  }
  0x24   : > { %s1372_s16 = sshll.u32 (%p51_p5), %s1744_s21, 3  ;;  %s1371_s17 = sshll.u32 (%p51_p5), %s450_s30, 5 }
  0x25   : > { %s2281_s0 = sld [smem:[#allocation16_spill]] (%p51_p5)  ;;  %s452_s23 = scalar_lea.vmem (%p51_p5), [#allocation2], %s1371_s17 }
  0x2b   : > { %s454_s27 = scalar_lea.vmem %s2281_s0, %s1372_s16 }
  0x2c   : > { %v489_v0 = vld [vmem:[%s454_s27] sm:$0xff]  ;;  %v491_v1 = vld [vmem:[%s454_s27 + $0x10] sm:$0xff] }
  0x2d   : > { %v493_v2 = vld [vmem:[%s454_s27 + $0x20] sm:$0xff]  ;;  %490 = vst [vmem:[%s452_s23] sm:$0xff] %v489_v0  ;;  %492 = vst [vmem:[%s452_s23 + $0x8] sm:$0xff] %v491_v1  ;;  %v495_v3 = vld [vmem:[%s454_s27 + $0x30] sm:$0xff] }
  0x2e   : > { %494 = vst [vmem:[%s452_s23 + $0x10] sm:$0xff] %v493_v2  ;;  %496 = vst [vmem:[%s452_s23 + $0x18] sm:$0xff] %v495_v3 }
  0x2f PF: > { %p1373_p10 = scmp.ge.s32.totalorder %s1744_s21, 1  ;;  %p501_p11 = scmp.lt.s32.totalorder %s1744_s21, 3 }
  0x31   : > { %p502_p12 = pnand %p1373_p10, %p501_p11 }
  0x32   : > { %s1897_s30 = sand.u32 (!%p502_p12), 1, %s1736_s19   ;;  %s2282_s2 = sld [smem:[#allocation18_spill]] (!%p502_p12) }
  0x33   : > { %505 = sbr.rel (%p502_p12) target bundleno = 956 (0x3bc), region = 98  ;;  %s2258_s16 = sshll.u32 (!%p502_p12), %s1897_s30, 5 }
  0x34   : > { %s510_s26 = scalar_lea.vmem (!%p502_p12), [#allocation2], %s2258_s16  ;;  %s2283_s4 = sld [smem:[#allocation20_spill]] (!%p502_p12) }
  0x35   : > { %s2284_s1 = sld [smem:[#allocation17_spill]] (!%p502_p12)  ;;  %s1375_s25 = sshll.u32 (!%p502_p12), %s1897_s30, 4 }
  0x36   : > { %s2285_s8 = sld [smem:[#allocation24_spill]] (!%p502_p12)  ;;  %s1994_s0 = scalar_lea.vmem (!%p502_p12), [#allocation7], %s1375_s25 }
  0x37   : > { %s2286_s5 = sld [smem:[#allocation21_spill]] (!%p502_p12)  ;;  %s2015_s16 = scalar_lea.vmem (!%p502_p12), [#allocation3], %s1375_s25 }
  0x38   : > { %v1746_v4 = vmov 0.0   ;;  %vm1747_vm0 = vmmov 0   ;;  %v1748_v5 = vmov 0   ;;  %v584_v6 = vld [vmem:[%s2282_s2 + $0x10] sm:$0xf]  ;;  %v582_v7 = vld [vmem:[%s2282_s2] sm:$0xff] }
  0x39   : > { %1427 = vmatprep.subr.mxu0 %v1746_v4  ;;  %1435 = vmatprep.mubr.msk.f32.mxu0 %vm1747_vm0, %v1746_v4  ;;  %v578_v8 = vld [vmem:[%s510_s26 + $0x18] sm:$0xff]  ;;  %v577_v9 = vld [vmem:[%s510_s26 + $0x10] sm:$0xff]  ;;  %v583_v10 = vld [vmem:[%s2282_s2 + $0x8] sm:$0xff]  ;;  %vm600_vm1 = vcmask 261120   ;;  %s2287_s6 = sld [smem:[#allocation22_spill]]  ;;  %vm710_vm2 = vcmask 162816  }
  0x3a   : > { %1550 = vset.pattern.permute.xlu0 %v1748_v5  ;;  %1551 = vset.pattern.permute.xlu1 %v1748_v5  ;;  %v576_v11 = vld [vmem:[%s510_s26 + $0x8] sm:$0xff]  ;;  %v575_v13 = vld [vmem:[%s510_s26] sm:$0xff]  ;;  %s2288_s10 = sld [smem:[#allocation26_spill]]  ;;  %vm717_vm3 = vcmask 1043456   ;;  %vm863_vm4 = vcmask 1041408   ;;  %vm853_vm5 = vcmask 80896  }
  0x3b   : > { %597 = vperm.xlu0 %1550, %v584_v6   ;;  %587 = vperm.xlu1 %1551, %v582_v7   ;;  %v699_v12 = vld [vmem:[%s2283_s4 + $0x8] sm:$0x3]  ;;  %v579_v14 = vld [vmem:[%s2284_s1] sm:$0xff]  ;;  %v581_v20 = vld [vmem:[%s2284_s1 + $0x10] sm:$0xf]  ;;  %s2289_s3 = sld [smem:[#allocation19_spill]] }
  0x3c   : > { %1428 = vmatpush3.msra.mxu0 %v578_v8  ;;  %v698_v15 = vld [vmem:[%s2283_s4] sm:$0xff]  ;;  %v837_v16 = vld [vmem:[%s2285_s8 + $0x10] sm:$0xf]  ;;  %v580_v17 = vld [vmem:[%s2284_s1 + $0x8] sm:$0xff]  ;;  %s2259_s1 = smul.u32 24, %s1897_s30  ;;  %s2290_s7 = sld [smem:[#allocation23_spill]] }
  0x3d   : > { %1429 = vmatprep.subr.mxu0 %v1746_v4  ;;  %v836_v18 = vld [vmem:[%s2285_s8 + $0x8] sm:$0xff]  ;;  %v835_v19 = vld [vmem:[%s2285_s8] sm:$0xff]  ;;  %s2291_s9 = sld [smem:[#allocation25_spill]] }
  0x3e   : > { %1430 = vmatpush3.msra.mxu0 %v577_v9  ;;  %v800_v21 = vld [vmem:[%s2286_s5] sm:$0xff]  ;;  %v801_v22 = vld [vmem:[%s2286_s5 + $0x8] sm:$0x3]  ;;  %s1979_s27 = scalar_lea.vmem [#allocation8], %s2259_s1  ;;  %s2292_s1 = smul.u32 24, %s1897_s30 }
  0x3f   : > { %1431 = vmatprep.subr.mxu0 %v1746_v4  ;;  %592 = vperm.xlu0 %1550, %v583_v10   ;;  %v814_v23 = vld [vmem:[%s2287_s6] sm:$0xff]  ;;  %v815_v24 = vld [vmem:[%s2287_s6 + $0x8] sm:$0x3]  ;;  %s1163_s23 = sshll.u32 %s1979_s27, 4  ;;  %s2058_s23 = int_to_ptr.vmem [resolvable:$true] %s1163_s23 }
  0x40   : > { %1432 = vmatpush3.msra.mxu0 %v576_v11  ;;  %707 = vperm.xlu1 %1551, %v699_v12   ;;  %v957_v25 = vld [vmem:[%s2288_s10] sm:$0xff]  ;;  %v958_v26 = vld [vmem:[%s2288_s10 + $0x8] sm:$0xff]  ;;  %v959_v27 = vld [vmem:[%s2288_s10 + $0x10] sm:$0xff]  ;;  %s2029_s25 = scalar_lea.vmem [#allocation10], %s2292_s1  ;;  %s2260_s1 = sand.u32 1, %s1858_s22  }
  0x41   : > { %1433 = vmatprep.subr.mxu0 %v1746_v4  ;;  %v960_v28 = vld [vmem:[%s2288_s10 + $0x18] sm:$0xff]  ;;  %v696_v29 = vld [vmem:[%s2289_s3] sm:$0xff]  ;;  %v697_v45 = vld [vmem:[%s2289_s3 + $0x8] sm:$0x3]  ;;  %s2049_s3 = sshll.u32 %s1858_s22, 7  ;;  %s2062_s2 = scalar_lea.sflag [#allocation9], %s2260_s1 }
  0x42   : > { %1434 = vmatpush3.msra.mxu0 %v575_v13  ;;  %1450 = vmatprep.mubr.msk.f32.mxu1 %vm710_vm2, %v696_v29  ;;  %v832_v58 = vld [vmem:[%s2290_s7] sm:$0xff]  ;;  %v833_v1 = vld [vmem:[%s2290_s7 + $0x8] sm:$0xff]  ;;  %v834_v3 = vld [vmem:[%s2290_s7 + $0x10] sm:$0xf]  ;;  %s2056_s20 = scalar_lea.hbm %s2254_s14, %s2049_s3  ;;  %s1572_s5 = scalar_lea.vmem %s2058_s23, 384 }
  0x43   : > { %1436 = vmatmul.mubr.msk.f32.vlgmr.msra.gmra.mxu0 %vm600_vm1, %v579_v14  ;;  %702 = vperm.xlu0 %1550, %v698_v15   ;;  %v953_v7 = vld [vmem:[%s2291_s9] sm:$0xff]  ;;  %p1573_p13 = scmp.ne.s32.totalorder %s2058_s23, %s1572_s5 }
  0x44   : > { %1438 = vmatprep.mubr.msk.f32.mxu0 %vm1747_vm0, %v1746_v4  ;;  %850 = vperm.xlu1 %1551, %v837_v16  }
  0x45   : > { %p1574_p0 = pnand %p1573_p13, %p1876_p6 }
  0x47   : > { %1439 = vmatmul.mubr.msk.f32.gmra.mxu0 %vm600_vm1, %v580_v17  ;;  %845 = vperm.xlu0 %1550, %v836_v18   ;;  %p1575_p1 = pneg %p1574_p0 }
  0x48   : > { %1441 = vmatprep.mubr.msk.f32.mxu0 %vm1747_vm0, %v1746_v4  ;;  %840 = vperm.xlu1 %1551, %v835_v19  }
  0x4b   : > { %1442 = vmatmul.mubr.msk.f32.gmra.mxu0 %vm600_vm1, %v581_v20  ;;  %804 = vperm.xlu0 %1550, %v800_v21   ;;  %v954_v20 = vld [vmem:[%s2291_s9 + $0x8] sm:$0xff]  ;;  %v956_v21 = vld [vmem:[%s2291_s9 + $0x18] sm:$0xff] }
  0x4c   : > { %809 = vperm.xlu1 %1551, %v801_v22   ;;  %1472 = vmatprep.mubr.msk.f32.mxu0 %vm710_vm2, %v953_v7 }
  0x4f   : > { %818 = vperm.xlu0 %1550, %v814_v23  }
  0x50   : > { %823 = vperm.xlu1 %1551, %v815_v24  }
  0x53   : > { %963 = vperm.xlu0 %1550, %v957_v25  }
  0x54   : > { %968 = vperm.xlu1 %1551, %v958_v26  }
  0x57   : > { %973 = vperm.xlu0 %1550, %v959_v27  }
  0x58   : > { %978 = vperm.xlu1 %1551, %v960_v28  }
  0xb6   : > { %v598_v30 = vpop.permute.xlu0 %597  ;;  %v588_v31 = vpop.permute.xlu1 %587 }
  0xba   : > { %v593_v35 = vpop.permute.xlu0 %592 }
  0xbb   : > { %v708_v46 = vpop.permute.xlu1 %707 }
  0xbe   : > { %v703_v50 = vpop.permute.xlu0 %702 }
  0xbf   : > { %v851_v47 = vpop.permute.xlu1 %850 }
  0xc2   : > { %v846_v54 = vpop.permute.xlu0 %845 }
  0xc3   : > { %v841_v53 = vpop.permute.xlu1 %840 }
  0xc6   : > { %v805_v56 = vpop.permute.xlu0 %804 }
  0xc7   : > { %v810_v55 = vpop.permute.xlu1 %809 }
  0xca   : > { %v819_v0 = vpop.permute.xlu0 %818 }
  0xcb   : > { %v824_v61 = vpop.permute.xlu1 %823 }
 0x103   : > { %v676_v32 = vpop.f32.mrf.mxu0 }
 0x104   : > { %v677_v33 = vadd.f32 %v676_v32, %v588_v31 }
 0x105   : > { %v1437_v34 = vpop.f32.mrf.mxu0 }
 0x106   : > { %1552 = vtanh.f32 %v677_v33 }
 0x107   : > { %v681_v36 = vpop.f32.mrf.mxu0 }
 0x108   : > { %v682_v37 = vadd.f32 %v681_v36, %v593_v35 }
 0x109   : > { %v1440_v38 = vpop.f32.mrf.mxu0 }
 0x10a   : > { %1554 = vtanh.f32 %v682_v37 }
 0x10b   : > { %v686_v39 = vpop.f32.mrf.mxu0 }
 0x10c   : > { %v687_v40 = vadd.f32 %v686_v39, %v598_v30 }
 0x10d   : > { %v1443_v41 = vpop.f32.mrf.mxu0 }
 0x10e   : > { %1556 = vtanh.f32 %v687_v40 }
 0x113   : > { %v1553_v42 = vpop.eup %1552 }
 0x114   : > { %693 = vst [vmem:[%s1979_s27] sm:$0xff] %v1553_v42 }
 0x117   : > { %v1555_v43 = vpop.eup %1554 }
 0x118   : > { %694 = vst [vmem:[%s1979_s27 + $0x8] sm:$0xff] %v1555_v43 }
 0x11b   : > { %v1557_v44 = vpop.eup %1556 }
 0x11c   : > { %695 = vst [vmem:[%s1979_s27 + $0x10] sm:$0xf] %v1557_v44  ;;  %1444 = vmatprep.subr.msk.mxu1 %vm717_vm3, %v1557_v44  ;;  %s1749_s27 = smov [#allocation8]  }
 0x11d   : > { %1445 = vmatpush3.msk.msra.mxu1 %vm717_vm3, %v1557_v44  ;;  %s1576_s26 = sshll.u32 %s1749_s27, 4  ;;  %s1577_s26 = int_to_ptr.vmem [resolvable:$false] %s1576_s26 }
 0x11e   : > { %1446 = vmatprep.subr.mxu1 %v1555_v43  ;;  %s1578_s6 = scalar_lea.vmem %s1577_s26, 768  ;;  %p1579_p2 = scmp.lt.s32.totalorder %s2058_s23, %s1577_s26 }
 0x11f   : > { %1447 = vmatpush3.msra.mxu1 %v1555_v43  ;;  %p1580_p3 = scmp.lt.s32.totalorder %s1578_s6, %s1572_s5 }
 0x120   : > { %1448 = vmatprep.subr.mxu1 %v1553_v42 }
 0x121   : > { %1449 = vmatpush3.msra.mxu1 %v1553_v42  ;;  %p1581_p4 = por %p1580_p3, %p1579_p2 }
 0x122   : > { %1451 = vmatmul.mubr.msk.f32.vlgmr.msra.gmra.mxu1 %vm710_vm2, %v697_v45  ;;  %1453 = vmatprep.subr.mxu1 %v1746_v4 }
 0x123   : > { %1457 = vmatprep.mubr.msk.f32.mxu1 %vm1747_vm0, %v1746_v4  ;;  %p1582_p5 = pnand %p1581_p4, %p1575_p1 }
 0x1e2   : > { %v1452_v48 = vpop.f32.mrf.mxu1 }
 0x1e3   : > { %v793_v49 = vadd.f32 %v1452_v48, %v708_v46 }
 0x1e4   : > { %v787_v51 = vpop.f32.mrf.mxu1 }
 0x1e5   : > { %1558 = vtanh.f32 %v793_v49  ;;  %v788_v52 = vadd.f32 %v787_v51, %v703_v50 }
 0x1e7   : > { %1560 = vtanh.f32 %v788_v52 }
 0x1f2   : > { %v1559_v57 = vpop.eup %1558 }
 0x1f3   : > { %799 = vst [vmem:[%s1994_s0 + $0x8] sm:$0x3] %v1559_v57  ;;  %1454 = vmatpush3.msk.msra.mxu1 %vm863_vm4, %v1559_v57  ;;  %v813_v59 = vmul.f32 %v1559_v57, %v810_v55 }
 0x1f4   : > { %v1561_v60 = vpop.eup %1560  ;;  %1455 = vmatprep.subr.mxu1 %v1746_v4 }
 0x1f5   : > { %798 = vst [vmem:[%s1994_s0] sm:$0xff] %v1561_v60  ;;  %1456 = vmatpush3.msra.mxu1 %v1561_v60  ;;  %v812_v62 = vmul.f32 %v1561_v60, %v805_v56  ;;  %v827_v63 = vadd.f32 %v824_v61, %v813_v59 }
 0x1f6   : > { %1458 = vmatmul.mubr.msk.f32.vlgmr.msra.gmra.mxu1 %vm853_vm5, %v832_v58 }
 0x1f7   : > { %1460 = vmatprep.mubr.msk.f32.mxu1 %vm1747_vm0, %v1746_v4  ;;  %v826_v2 = vadd.f32 %v819_v0, %v812_v62  ;;  %1562 = vtanh.f32 %v827_v63 }
 0x1f9   : > { %1564 = vtanh.f32 %v826_v2 }
 0x1fa   : > { %1461 = vmatmul.mubr.msk.f32.gmra.mxu1 %vm853_vm5, %v833_v1 }
 0x1fb   : > { %1463 = vmatprep.mubr.msk.f32.mxu1 %vm1747_vm0, %v1746_v4  ;;  %v955_v4 = vld [vmem:[%s2291_s9 + $0x10] sm:$0xff] }
 0x1fe   : > { %1464 = vmatmul.mubr.msk.f32.gmra.mxu1 %vm853_vm5, %v834_v3 }
 0x1ff   : > { %1475 = vmatprep.mubr.msk.f32.mxu1 %vm710_vm2, %v955_v4 }
 0x204   : > { %v1563_v5 = vpop.eup %1562 }
 0x205   : > { %831 = vst [vmem:[%s2015_s16 + $0x8] sm:$0x3] %v1563_v5 }
 0x206   : > { %v1565_v6 = vpop.eup %1564 }
 0x207   : > { %830 = vst [vmem:[%s2015_s16] sm:$0xff] %v1565_v6 }
 0x2b6   : > { %v933_v8 = vpop.f32.mrf.mxu1 }
 0x2b7   : > { %v934_v9 = vadd.f32 %v933_v8, %v841_v53 }
 0x2b8   : > { %v1459_v10 = vpop.f32.mrf.mxu1 }
 0x2b9   : > { %1566 = vtanh.f32 %v934_v9 }
 0x2ba   : > { %v938_v11 = vpop.f32.mrf.mxu1 }
 0x2bb   : > { %v939_v12 = vadd.f32 %v938_v11, %v846_v54 }
 0x2bc   : > { %v1462_v13 = vpop.f32.mrf.mxu1 }
 0x2bd   : > { %1568 = vtanh.f32 %v939_v12 }
 0x2be   : > { %v943_v14 = vpop.f32.mrf.mxu1 }
 0x2bf   : > { %v944_v15 = vadd.f32 %v943_v14, %v851_v47 }
 0x2c0   : > { %v1465_v16 = vpop.f32.mrf.mxu1 }
 0x2c1   : > { %1570 = vtanh.f32 %v944_v15 }
 0x2c6   : > { %v1567_v17 = vpop.eup %1566 }
 0x2c7   : > { %950 = vst [vmem:[%s2029_s25] sm:$0xff] %v1567_v17 }
 0x2ca   : > { %v1569_v18 = vpop.eup %1568 }
 0x2cb   : > { %951 = vst [vmem:[%s2029_s25 + $0x8] sm:$0xff] %v1569_v18 }
 0x2ce   : > { %v1571_v19 = vpop.eup %1570 }
 0x2cf   : > { %952 = vst [vmem:[%s2029_s25 + $0x10] sm:$0xf] %v1571_v19  ;;  %1466 = vmatprep.subr.msk.mxu0 %vm717_vm3, %v1571_v19  ;;  %1478 = vmatprep.subr.msk.mxu1 %vm717_vm3, %v1571_v19 }
 0x2d0   : > { %1467 = vmatpush3.msk.msra.mxu0 %vm717_vm3, %v1571_v19  ;;  %1481 = vmatpush3.msk.msra.mxu1 %vm717_vm3, %v1571_v19 }
 0x2d1   : > { %1468 = vmatprep.subr.mxu0 %v1569_v18  ;;  %1479 = vmatprep.subr.mxu1 %v1569_v18 }
 0x2d2   : > { %1469 = vmatpush3.msra.mxu0 %v1569_v18  ;;  %1482 = vmatpush3.msra.mxu1 %v1569_v18 }
 0x2d3   : > { %1470 = vmatprep.subr.mxu0 %v1567_v17  ;;  %1480 = vmatprep.subr.mxu1 %v1567_v17 }
 0x2d4   : > { %1471 = vmatpush3.msra.mxu0 %v1567_v17  ;;  %1483 = vmatpush3.msra.mxu1 %v1567_v17 }
 0x2d5   : > { %1473 = vmatmul.mubr.msk.f32.vlgmr.msra.gmra.mxu0 %vm710_vm2, %v954_v20  ;;  %1476 = vmatmul.mubr.msk.f32.vlgmr.msra.gmra.mxu1 %vm710_vm2, %v956_v21 }
 0x2d6   : > { %1585 = shalt.err (!%p1582_p5)
}
 0x2d7   : > { %s1586_s4 = scalar_lea.hbm %s2056_s20, 384  ;;  %s1590_s27 = scalar_lea.hbm %s2254_s14, 768 }
 0x2d8   : > { %p1587_p7 = scmp.ne.s32.totalorder %s2056_s20, %s1586_s4  ;;  %p1591_p12 = scmp.lt.s32.totalorder %s2056_s20, %s2254_s14 }
 0x2d9   : > { %p1592_p13 = scmp.lt.s32.totalorder %s1590_s27, %s1586_s4 }
 0x2da   : > { %p1588_p10 = pnand %p1587_p7, %p1876_p6 }
 0x2db   : > { %p1593_p0 = por %p1592_p13, %p1591_p12 }
 0x2dc   : > { %p1589_p11 = pneg %p1588_p10 }
 0x2de   : > { %p1594_p1 = pnand %p1593_p0, %p1589_p11 }
 0x2e0   : > { %1597 = shalt.err (!%p1594_p1)
}
 0x2e1   : > { %s2261_s5 = smov 128   ;;  %s2263_s6 = smov 256  }
 0x2e2   : > { %s1752_s1 = smov 8   ;;  %s2092_s26 = scalar_lea.hbm %s2251_s11, %s2049_s3 }
 0x2e3   : > { %1488 = dma.vmem_to_hbm [thread:$0]  (%p1876_p6), %s2058_s23, 384, %s2056_s20, %s2062_s2, %s2261_s5, %s2263_s6, %s1752_s1  }
 0x2e4   : > { %s1118_s4 = sshll.u32 %s2015_s16, 4  ;;  %s2293_s17 = sshll.u32 %s2029_s25, 4  ;;  %s2097_s17 = int_to_ptr.vmem [resolvable:$true] %s2293_s17  ;;  %s2099_s4 = int_to_ptr.vmem [resolvable:$true] %s1118_s4 }
 0x2e5   : > { %s1086_s27 = scalar_lea.sflag [#allocation4], %s1897_s30  ;;  %s1598_s9 = scalar_lea.vmem %s2099_s4, 256 }
 0x2e6   : > { %p1599_p2 = scmp.ne.s32.totalorder %s2099_s4, %s1598_s9  ;;  %s1753_s23 = smov [#allocation3]  }
 0x2e7   : > { %s1602_s20 = sshll.u32 %s1753_s23, 4  ;;  %s1603_s20 = int_to_ptr.vmem [resolvable:$false] %s1602_s20 }
 0x2e8   : > { %p1600_p3 = pnand %p1599_p2, %p1876_p6  ;;  %s1604_s7 = scalar_lea.vmem %s1603_s20, 512 }
 0x2e9   : > { %p1605_p5 = scmp.lt.s32.totalorder %s2099_s4, %s1603_s20  ;;  %p1606_p7 = scmp.lt.s32.totalorder %s1604_s7, %s1598_s9 }
 0x2ea   : > { %p1601_p4 = pneg %p1600_p3 }
 0x2eb   : > { %p1607_p10 = por %p1606_p7, %p1605_p5 }
 0x2ed   : > { %p1608_p11 = pnand %p1607_p10, %p1601_p4 }
 0x2ef   : > { %1611 = shalt.err (!%p1608_p11)
}
 0x2f0   : > { %s1612_s16 = scalar_lea.hbm %s2092_s26, 256  ;;  %s1616_s23 = scalar_lea.hbm %s2251_s11, 512 }
 0x2f1   : > { %p1613_p12 = scmp.ne.s32.totalorder %s2092_s26, %s1612_s16  ;;  %p1617_p1 = scmp.lt.s32.totalorder %s2092_s26, %s2251_s11 }
 0x2f2   : > { %p1618_p2 = scmp.lt.s32.totalorder %s1616_s23, %s1612_s16 }
 0x2f3   : > { %p1614_p13 = pnand %p1613_p12, %p1876_p6 }
 0x2f4   : > { %p1619_p3 = por %p1618_p2, %p1617_p1 }
 0x2f5   : > { %p1615_p0 = pneg %p1614_p13 }
 0x2f7   : > { %p1620_p4 = pnand %p1619_p3, %p1615_p0 }
 0x2f9   : > { %1623 = shalt.err (!%p1620_p4)
}
 0x2fa   : > { %s2294_s9 = smov 256   ;;  %s2295_s20 = smov 128  }
 0x2fb   : > { %1485 = dma.vmem_to_hbm [thread:$0]  (%p1876_p6), %s2099_s4, 256, %s2092_s26, %s1086_s27, %s2295_s20, %s2294_s9, %s1752_s1  }
 0x2fc   : > { %s1177_s6 = scalar_lea.hbm %s2255_s15, %s2049_s3  ;;  %s1624_s16 = scalar_lea.vmem %s2097_s17, 384 }
 0x2fd   : > { %p1625_p5 = scmp.ne.s32.totalorder %s2097_s17, %s1624_s16  ;;  %s1754_s25 = smov [#allocation10]  }
 0x2fe   : > { %s1628_s8 = sshll.u32 %s1754_s25, 4  ;;  %s1629_s8 = int_to_ptr.vmem [resolvable:$false] %s1628_s8 }
 0x2ff   : > { %p1626_p7 = pnand %p1625_p5, %p1876_p6  ;;  %s1630_s23 = scalar_lea.vmem %s1629_s8, 768 }
 0x300   : > { %p1631_p11 = scmp.lt.s32.totalorder %s2097_s17, %s1629_s8  ;;  %p1632_p12 = scmp.lt.s32.totalorder %s1630_s23, %s1624_s16 }
 0x301   : > { %p1627_p10 = pneg %p1626_p7 }
 0x302   : > { %p1633_p13 = por %p1632_p12, %p1631_p11 }
 0x304   : > { %p1634_p0 = pnand %p1633_p13, %p1627_p10 }
 0x306   : > { %1637 = shalt.err (!%p1634_p0)
}
 0x307   : > { %s1638_s10 = scalar_lea.hbm %s1177_s6, 384  ;;  %s1642_s27 = scalar_lea.hbm %s2255_s15, 768 }
 0x308   : > { %p1639_p1 = scmp.ne.s32.totalorder %s1177_s6, %s1638_s10  ;;  %p1643_p4 = scmp.lt.s32.totalorder %s1177_s6, %s2255_s15 }
 0x309   : > { %p1644_p5 = scmp.lt.s32.totalorder %s1642_s27, %s1638_s10 }
 0x30a   : > { %p1640_p2 = pnand %p1639_p1, %p1876_p6 }
 0x30b   : > { %p1645_p7 = por %p1644_p5, %p1643_p4 }
 0x30c   : > { %p1641_p3 = pneg %p1640_p2 }
 0x30e   : > { %p1646_p9 = pnand %p1645_p7, %p1641_p3 }
 0x310   : > { %1649 = shalt.err (!%p1646_p9)
}
 0x311   : > { %1489 = dma.vmem_to_hbm [thread:$0]  (%p1876_p6), %s2097_s17, 384, %s1177_s6, %s2062_s2, %s2295_s20, %s2294_s9, %s1752_s1   ;;  %v969_v22 = vpop.permute.xlu1 %968  ;;  %v964_v23 = vpop.permute.xlu0 %963 }
 0x312   : > { %s2296_s16 = sshll.u32 %s1897_s30, 5  ;;  %s1148_s10 = sshll.u32 %s1994_s0, 4  ;;  %s2160_s10 = int_to_ptr.vmem [resolvable:$true] %s1148_s10 }
 0x313   : > { %s553_s25 = scalar_lea.vmem [#allocation5], %s2296_s16  ;;  %s2158_s0 = scalar_lea.hbm %s2252_s12, %s2049_s3 }
 0x314   : > { %s1133_s8 = sshll.u32 %s553_s25, 4  ;;  %s2166_s23 = scalar_lea.hbm %s2253_s13, %s2049_s3  ;;  %s2152_s8 = int_to_ptr.vmem [resolvable:$true] %s1133_s8 }
 0x315   : > { %v979_v24 = vpop.permute.xlu1 %978  ;;  %v974_v27 = vpop.permute.xlu0 %973  ;;  %s2297_s26 = sand.u32 1, %s1858_s22   ;;  %s1650_s27 = scalar_lea.vmem %s2152_s8, 512 }
 0x316   : > { %s2170_s4 = scalar_lea.sflag [#allocation6], %s2297_s26  ;;  %p1651_p9 = scmp.ne.s32.totalorder %s2152_s8, %s1650_s27 }
 0x317   : > { %s1755_s7 = smov [#allocation5]  }
 0x318   : > { %p1652_p10 = pnand %p1651_p9, %p1876_p6  ;;  %s1654_s5 = sshll.u32 %s1755_s7, 4  ;;  %s1655_s5 = int_to_ptr.vmem [resolvable:$false] %s1654_s5 }
 0x319   : > { %s1656_s16 = scalar_lea.vmem %s1655_s5, 1024  ;;  %p1657_p12 = scmp.lt.s32.totalorder %s2152_s8, %s1655_s5 }
 0x31a   : > { %p1653_p11 = pneg %p1652_p10  ;;  %p1658_p13 = scmp.lt.s32.totalorder %s1656_s16, %s1650_s27 }
 0x31c   : > { %p1659_p0 = por %p1658_p13, %p1657_p12 }
 0x31e   : > { %p1660_p1 = pnand %p1659_p0, %p1653_p11 }
 0x395   : > { %v1474_v25 = vpop.f32.mrf.mxu0  ;;  %v1477_v26 = vpop.f32.mrf.mxu1 }
 0x396   : > { %v1068_v28 = vadd.f32 %v1474_v25, %v969_v22  ;;  %v1078_v29 = vadd.f32 %v1477_v26, %v979_v24 }
 0x397   : > { %v1062_v30 = vpop.f32.mrf.mxu0  ;;  %v1072_v31 = vpop.f32.mrf.mxu1 }
 0x398   : > { %1082 = vst [vmem:[%s553_s25 + $0x8] sm:$0xff] %v1068_v28  ;;  %1084 = vst [vmem:[%s553_s25 + $0x18] sm:$0xff] %v1078_v29  ;;  %v1063_v32 = vadd.f32 %v1062_v30, %v964_v23  ;;  %v1073_v33 = vadd.f32 %v1072_v31, %v974_v27 }
 0x39a   : > { %1081 = vst [vmem:[%s553_s25] sm:$0xff] %v1063_v32  ;;  %1083 = vst [vmem:[%s553_s25 + $0x10] sm:$0xff] %v1073_v33 }
 0x39b   : > { %1663 = shalt.err (!%p1660_p1)
}
 0x39c   : > { %s1664_s3 = scalar_lea.hbm %s2158_s0, 512  ;;  %s1668_s30 = scalar_lea.hbm %s2252_s12, 1024 }
 0x39d   : > { %p1665_p2 = scmp.ne.s32.totalorder %s2158_s0, %s1664_s3  ;;  %p1669_p5 = scmp.lt.s32.totalorder %s2158_s0, %s2252_s12 }
 0x39e   : > { %p1670_p7 = scmp.lt.s32.totalorder %s1668_s30, %s1664_s3 }
 0x39f   : > { %p1666_p3 = pnand %p1665_p2, %p1876_p6 }
 0x3a0   : > { %p1671_p9 = por %p1670_p7, %p1669_p5 }
 0x3a1   : > { %p1667_p4 = pneg %p1666_p3 }
 0x3a3   : > { %p1672_p10 = pnand %p1671_p9, %p1667_p4 }
 0x3a5   : > { %1675 = shalt.err (!%p1672_p10)
}
 0x3a6   : > { %1486 = dma.vmem_to_hbm [thread:$0]  (%p1876_p6), %s2152_s8, 512, %s2158_s0, %s2170_s4, %s2295_s20, %s2294_s9, %s1752_s1  }
 0x3a7   : > { %s1676_s6 = scalar_lea.vmem %s2160_s10, 256  ;;  %s1756_s26 = smov [#allocation7]  }
 0x3a8   : > { %p1677_p11 = scmp.ne.s32.totalorder %s2160_s10, %s1676_s6  ;;  %s1680_s27 = sshll.u32 %s1756_s26, 4  ;;  %s1681_s27 = int_to_ptr.vmem [resolvable:$false] %s1680_s27 }
 0x3a9   : > { %s1682_s7 = scalar_lea.vmem %s1681_s27, 512  ;;  %p1683_p0 = scmp.lt.s32.totalorder %s2160_s10, %s1681_s27 }
 0x3aa   : > { %p1678_p12 = pnand %p1677_p11, %p1876_p6  ;;  %p1684_p1 = scmp.lt.s32.totalorder %s1682_s7, %s1676_s6 }
 0x3ac   : > { %p1679_p13 = pneg %p1678_p12  ;;  %p1685_p2 = por %p1684_p1, %p1683_p0 }
 0x3ae   : > { %p1686_p3 = pnand %p1685_p2, %p1679_p13 }
 0x3b0   : > { %1689 = shalt.err (!%p1686_p3)
}
 0x3b1   : > { %s1690_s5 = scalar_lea.hbm %s2166_s23, 256  ;;  %s1694_s16 = scalar_lea.hbm %s2253_s13, 512 }
 0x3b2   : > { %p1691_p4 = scmp.ne.s32.totalorder %s2166_s23, %s1690_s5  ;;  %p1695_p9 = scmp.lt.s32.totalorder %s2166_s23, %s2253_s13 }
 0x3b3   : > { %p1696_p10 = scmp.lt.s32.totalorder %s1694_s16, %s1690_s5 }
 0x3b4   : > { %p1692_p5 = pnand %p1691_p4, %p1876_p6 }
 0x3b5   : > { %p1697_p11 = por %p1696_p10, %p1695_p9 }
 0x3b6   : > { %p1693_p7 = pneg %p1692_p5 }
 0x3b8   : > { %p1698_p12 = pnand %p1697_p11, %p1693_p7 }
 0x3ba   : > { %1701 = shalt.err (!%p1698_p12)
}
 0x3bb   : > { %1487 = dma.vmem_to_hbm [thread:$0]  (%p1876_p6), %s2160_s10, 256, %s2166_s23, %s2170_s4, %s2295_s20, %s2294_s9, %s1752_s1  }
 0x3bc PF: > { %s1193_s25 = sand.u32 1, %s1732_s18   ;;  %p2298_p13 = scmp.ge.s32.totalorder %s1744_s21, 2 }
 0x3bd   : > { %s1194_s30 = scalar_lea.sflag [#allocation4], %s1193_s25 }
 0x3be   : > { %p1496_p0 = pnand %p2298_p13, %p1882_p8 }
 0x3c0   : > { %p1497_p1 = pneg %p1496_p0 }
 0x3c2   : > { %1719 = dma.done.wait (%p1497_p1), %s1194_s30, 256  }
 0x3c3   : > { %1721 = vsyncadd (%p1497_p1), %s1194_s30, 4294967040  ;;  %s2299_s28 = sadd.s32 4294967294, %s1744_s21  }
 0x3c4   : > { %s1202_s2 = sand.u32 1, %s2299_s28  }
 0x3c5   : > { %s1203_s17 = scalar_lea.sflag [#allocation6], %s1202_s2 }
 0x3c6   : > { %1723 = dma.done.wait (%p1497_p1), %s1203_s17, 768  }
 0x3c7   : > { %1725 = vsyncadd (%p1497_p1), %s1203_s17, 4294966528  ;;  %s1221_s6 = scalar_lea.sflag [#allocation9], %s1202_s2 }
 0x3c8   : > { %1727 = dma.done.wait (%p1497_p1), %s1221_s6, 768  }
 0x3c9   : > { %1729 = vsyncadd (%p1497_p1), %s1221_s6, 4294966528  ;;  %s2300_s1 = sld [smem:[#allocation14_spill]]  ;;  %p32_p6 = scmp.ge.s32.totalorder %s1862_s24, 4  }
 0x3ca   : > { %s2301_s20 = sld [smem:[#allocation15_spill]]  ;;  %s2302_s18 = smov %s1736_s19 }
 0x3cb   : > { %s2304_s21 = smov %s1862_s24  ;;  %34 = sbr.rel (!%p32_p6) target bundleno = 19 (0x13), region = 206 }
 0x3cf   : > { %s2303_s19 = smov %s2300_s1 }
 0x3d0   :  { %1235 = vsyncpa [#allocation4], 1 }
 0x3d1   :  { %1237 = vsyncpa [#allocation4 + $0x1], 1 }
 0x3d2   :  { %1238 = vsyncpa [#allocation6], 1 }
 0x3d3   :  { %1240 = vsyncpa [#allocation6 + $0x1], 1 }
 0x3d4   :  { %1241 = vsyncpa [#allocation9], 1 }
 0x3d5   :  { %1243 = vsyncpa [#allocation9 + $0x1], 1 }

</bundles_post_ra>
